<compile_context>
chip_gen: v7x
topology: tpu7x:2x2x1
jax: 0.10.0
libtpu: 0.0.40
codegen_flags: <defaults>
</compile_context>

<pallas_src>
import jax
import jax.numpy as jnp
from jax.experimental import pallas as pl
from jax.experimental.pallas import tpu as pltpu


def _hbm_memcpy_kernel(x_hbm, o_hbm, sem):
    # Both refs live in HBM (memory_space=pl.ANY) with identical shape/dtype/
    # layout: one async DMA copies the whole array without bouncing through
    # VMEM and without any grid/tiling overhead.
    cp = pltpu.make_async_copy(x_hbm, o_hbm, sem)
    cp.start()
    cp.wait()


def multi_image_input(images: jax.Array) -> dict:
    """JAX/Pallas equivalent of MultiImageInput.forward.

    images: (B, I, C, H, W)  (any rank >= 4; the trailing 3 dims are kept)
    returns {'images': (B*I, C, H, W), 'images_per_example': I}
    """
    images_per_example = images.shape[1]

    # Zero-cost row-major metadata reshape so the DMA's src/dst refs have
    # identical shapes and byte-identical contiguous layouts.  (A pure-JAX
    # implementation of the whole module is just this reshape; the kernel
    # below only materializes it into a fresh buffer.)
    flat = images.reshape((-1,) + images.shape[-3:])

    out = pl.pallas_call(
        _hbm_memcpy_kernel,
        out_shape=jax.ShapeDtypeStruct(flat.shape, flat.dtype),
        in_specs=[pl.BlockSpec(memory_space=pl.ANY)],   # raw HBM ref, no auto-DMA
        out_specs=pl.BlockSpec(memory_space=pl.ANY),    # raw HBM ref, no auto-DMA
        scratch_shapes=[pltpu.SemaphoreType.DMA],
    )(flat)

    return {"images": out, "images_per_example": images_per_example}


if __name__ == "__main__":
    key = jax.random.PRNGKey(0)
    B = 2                   # examples
    IMAGES_PER_EXAMPLE = 3  # images per example
    C, H, W = 3, 16, 16     # small image tensor

    x = jax.random.normal(
        key, (B, IMAGES_PER_EXAMPLE, C, H, W), dtype=jnp.float32
    )

    out = multi_image_input(x)
    result = jax.block_until_ready(out["images"])

    # Reference: pure view/reshape semantics of the PyTorch module.
    ref = x.reshape(-1, C, H, W)
    assert result.shape == (B * IMAGES_PER_EXAMPLE, C, H, W), result.shape
    assert out["images_per_example"] == IMAGES_PER_EXAMPLE
    assert jnp.array_equal(result, ref), "mismatch vs reference reshape"

    print("KERNEL_OK")
</pallas_src>

<mosaic_0001>
module attributes {stable_mosaic.version = 11 : i64} {
  func.func @_hbm_memcpy_kernel(%arg0: memref<6x3x16x16xf32, #tpu.memory_space<any>>, %arg1: memref<6x3x16x16xf32, #tpu.memory_space<any>>, %arg2: memref<!tpu.dma_semaphore, #tpu.memory_space<semaphore_mem>>) attributes {dimension_semantics = [], scalar_prefetch = 0 : i64, scratch_operands = 1 : i64, tpu.core_type = #tpu.core_type<tc>} {
    tpu.enqueue_dma source(%arg0 : memref<6x3x16x16xf32, #tpu.memory_space<any>>) target(%arg1 : memref<6x3x16x16xf32, #tpu.memory_space<any>>) target_semaphore(%arg2 : memref<!tpu.dma_semaphore, #tpu.memory_space<semaphore_mem>>)
    tpu.wait_dma2 semaphore(%arg2 : memref<!tpu.dma_semaphore, #tpu.memory_space<semaphore_mem>>) src(%arg0 : memref<6x3x16x16xf32, #tpu.memory_space<any>>) dst(%arg1 : memref<6x3x16x16xf32, #tpu.memory_space<any>>)
    return
  }
}

</mosaic_0001>

<bundles_post_ra>
// kernel: tpu_custom_call.1
= control target key start
LH: loop header
LB: loop body
LE: loop exit
PB: predicated region body
PF: predicated region fallthrough
CT: control target
= control target key end

     0   :  { %s36_s6 = smov [#allocation2]   ;;  %s37_s7 = smov [#allocation3]   ;;  %s55_s0 = inlined_call_operand.hbm [shape: f32[6,3,16,16], index: 0, kind: input, shape index: {}]   ;;  %s56_s1 = inlined_call_operand.hbm [shape: f32[6,3,16,16], index: 1, kind: output, shape index: {}]  }
   0x1   :  { %s38_s8 = smov 0  }
   0x2   :  { %18 = dma.general %s55_s0, 4608, %s56_s1, %s36_s6, %s37_s7, [#allocation4], %s38_s8, 0  }
   0x3   :  { %34 = dma.done.wait [#allocation2], 4608 }
   0x4   :  { %35 = vsyncadd [#allocation2], 4294962688 }
   0x5   :  { %24 = vsyncmov [#allocation2] }
   0x8   :  { %s25_s13 = vpop.sfrf %24 }
   0x9   :  { %p30_p0 = scmp.ne.s32.totalorder %s25_s13, 0 }
   0xb   :  { %29 = shalt.err (%p30_p0)  }

</bundles_post_ra>
